<compile_context>
chip_gen: v7x
topology: tpu7x:2x2x1
jax: 0.10.0
libtpu: 0.0.40
codegen_flags: <defaults>
</compile_context>

<pallas_src>
import functools

import jax
import jax.numpy as jnp
from jax import lax
from jax.experimental import pallas as pl
from jax.experimental.pallas import tpu as pltpu


def _rescls_kernel(n_blocks, nb, sub_tl, num_sub, compute_dtype,
                   x_ref,                       # (nb, c_in, tl)   f32
                   w_in_ref, b_in_ref,          # (unit, c_in), (unit, 1)
                   bn_scale_ref, bn_shift_ref,  # (n, unit, 1) f32
                   w_ch_ref, b_ch_ref,          # (n, unit, unit), (n, unit, 1)
                   w_out_ref, b_out_ref,        # (c_out, unit), (c_out, 1)
                   o_ref):                      # (nb, c_out, tl)
    # Grid-invariant, tiny operands: read once per step.
    w_in = w_in_ref[...]
    b_in = b_in_ref[...]
    w_out = w_out_ref[...]
    b_out = b_out_ref[...]

    def compute_tile(x_f32):
        # In-kernel cast to the MXU operand dtype (no wrapper-side HBM pass).
        x = x_f32.astype(compute_dtype)
        # intro 1x1 conv: (unit, c_in) @ (c_in, tile) -> (unit, tile), f32 accumulation.
        h = jnp.dot(w_in, x, preferred_element_type=jnp.float32) + b_in
        # residual blocks (n_blocks is a Python constant -> statically unrolled)
        for i in range(n_blocks):
            # relu(BN(h)) in f32; per-channel affine broadcasts along the lane dim.
            d = jnp.maximum(h * bn_scale_ref[i] + bn_shift_ref[i], 0.0)
            d = jnp.dot(w_ch_ref[i], d.astype(compute_dtype),
                        preferred_element_type=jnp.float32)
            h = h + d + b_ch_ref[i]
        # outro 1x1 conv
        out = jnp.dot(w_out, h.astype(compute_dtype),
                      preferred_element_type=jnp.float32) + b_out
        return out

    for bi in range(nb):                      # static unroll over batch rows in block
        if num_sub == 1:
            o_ref[bi] = compute_tile(x_ref[bi]).astype(o_ref.dtype)
        else:
            # Unrolled loop over lane sub-tiles: keeps the DMA tile large while
            # bounding the live (unit, sub_tl) f32 intermediates.
            def body(s, carry, bi=bi):
                start = s * sub_tl
                if not isinstance(start, int):
                    start = pl.multiple_of(start, sub_tl)
                out = compute_tile(x_ref[bi, :, pl.ds(start, sub_tl)])
                o_ref[bi, :, pl.ds(start, sub_tl)] = out.astype(o_ref.dtype)
                return carry
            lax.fori_loop(0, num_sub, body, None, unroll=True)


def rescls_forward(x_ncl, params, *, tl=2048, sub_tl=512, nb=1,
                   compute_dtype=jnp.bfloat16, out_dtype=None,
                   min_grid_steps=4):
    """x_ncl: (B, C_in, L) float32, channels-first as in PyTorch.

    tl:            position tile DMA'd per grid step (lane dim). Multiple of 128 (or == L).
    sub_tl:        in-kernel lane sub-tile size (bounds live intermediates).
    nb:            batch rows per grid step (amortizes step overhead when L is short).
    compute_dtype: dtype of the MXU operands (bf16 recommended on v6e/v7x; accumulation
                   is always f32; BN/ReLU/residual math stays f32).
    out_dtype:     output dtype (default: x dtype). bf16 cuts writeback traffic.
    min_grid_steps: keep at least this many grid steps so v7x's 2 TCs both get work.
    """
    (w_in, b_in, bn_scale, bn_shift, w_ch, b_ch, w_out, b_out) = params
    B, c_in, L = x_ncl.shape
    n_blocks, unit, _ = w_ch.shape
    c_out = w_out.shape[0]
    out_dtype = x_ncl.dtype if out_dtype is None else out_dtype

    assert B % nb == 0, "B must be divisible by the batch block"
    tl = min(tl, L)
    assert L % tl == 0, "L must be divisible by the position tile"
    assert tl == L or tl % 128 == 0, "position tile must be lane-aligned"

    # v7x megacore: shrink tl (keeping lane alignment + divisibility) until there are
    # enough grid steps for both TensorCores. No-op on single-TC v5e/v6e.
    while (B // nb) * (L // tl) < min_grid_steps and tl % 256 == 0:
        tl //= 2

    # In-kernel sub-tiling setup.
    sub_tl = min(sub_tl, tl)
    if tl % sub_tl != 0 or sub_tl % 128 != 0:
        sub_tl = tl
    num_sub = tl // sub_tl

    # One-time host-side layout/dtype prep of the tiny parameter operands only
    # (x itself stays f32 in HBM and is cast in-kernel).
    w_in_c = w_in.astype(compute_dtype)                                 # (unit, c_in)
    w_ch_c = w_ch.astype(compute_dtype)                                 # (n, unit, unit)
    w_out_c = w_out.astype(compute_dtype)                               # (c_out, unit)
    b_in_2d = b_in.reshape(unit, 1).astype(jnp.float32)
    b_ch_3d = b_ch.reshape(n_blocks, unit, 1).astype(jnp.float32)
    b_out_2d = b_out.reshape(c_out, 1).astype(jnp.float32)
    bn_scale_3d = bn_scale.reshape(n_blocks, unit, 1).astype(jnp.float32)
    bn_shift_3d = bn_shift.reshape(n_blocks, unit, 1).astype(jnp.float32)

    kernel = functools.partial(_rescls_kernel, n_blocks, nb, sub_tl, num_sub,
                               compute_dtype)

    # Advisory cost estimate so XLA schedules neighboring ops sensibly.
    flops = 2 * B * L * (c_in * unit + n_blocks * unit * unit + unit * c_out)
    param_bytes = sum(int(p.size) * p.dtype.itemsize
                      for p in (w_in_c, b_in_2d, bn_scale_3d, bn_shift_3d,
                                w_ch_c, b_ch_3d, w_out_c, b_out_2d))
    bytes_accessed = (int(x_ncl.size) * x_ncl.dtype.itemsize
                      + B * c_out * L * jnp.dtype(out_dtype).itemsize
                      + param_bytes)
    cost = pl.CostEstimate(flops=flops, transcendentals=0,
                           bytes_accessed=bytes_accessed)

    out = pl.pallas_call(
        kernel,
        out_shape=jax.ShapeDtypeStruct((B, c_out, L), out_dtype),
        grid_spec=pltpu.PrefetchScalarGridSpec(
            num_scalar_prefetch=0,
            grid=(B // nb, L // tl),
            in_specs=[
                # x tile: nb batch rows, lane dim = positions (lane-dense), stays f32.
                pl.BlockSpec((nb, c_in, tl), lambda b, l: (b, 0, l)),
                # grid-invariant weights / per-channel vectors (stay resident in VMEM)
                pl.BlockSpec((unit, c_in), lambda b, l: (0, 0)),               # intro W
                pl.BlockSpec((unit, 1), lambda b, l: (0, 0)),                  # intro b
                pl.BlockSpec((n_blocks, unit, 1), lambda b, l: (0, 0, 0)),     # BN scale
                pl.BlockSpec((n_blocks, unit, 1), lambda b, l: (0, 0, 0)),     # BN shift
                pl.BlockSpec((n_blocks, unit, unit), lambda b, l: (0, 0, 0)),  # chorus W
                pl.BlockSpec((n_blocks, unit, 1), lambda b, l: (0, 0, 0)),     # chorus b
                pl.BlockSpec((c_out, unit), lambda b, l: (0, 0)),              # outro W
                pl.BlockSpec((c_out, 1), lambda b, l: (0, 0)),                 # outro b
            ],
            out_specs=pl.BlockSpec((nb, c_out, tl), lambda b, l: (b, 0, l)),
        ),
        compiler_params=pltpu.CompilerParams(
            dimension_semantics=("parallel", "parallel")),
        cost_estimate=cost,
    )(x_ncl, w_in_c, b_in_2d, bn_scale_3d, bn_shift_3d,
      w_ch_c, b_ch_3d, w_out_c, b_out_2d)

    return out


def init_params(key, n, intro, unit, outro):
    ks = jax.random.split(key, 10)
    scale = 0.1
    w_in = scale * jax.random.normal(ks[0], (unit, intro), jnp.float32)
    b_in = scale * jax.random.normal(ks[1], (unit,), jnp.float32)
    w_ch = scale * jax.random.normal(ks[2], (n, unit, unit), jnp.float32)
    b_ch = scale * jax.random.normal(ks[3], (n, unit), jnp.float32)
    w_out = scale * jax.random.normal(ks[4], (outro, unit), jnp.float32)
    b_out = scale * jax.random.normal(ks[5], (outro,), jnp.float32)
    # BatchNorm1d params + running stats (inference mode), folded into scale/shift.
    gamma = 1.0 + scale * jax.random.normal(ks[6], (n, unit), jnp.float32)
    beta = scale * jax.random.normal(ks[7], (n, unit), jnp.float32)
    running_mean = scale * jax.random.normal(ks[8], (n, unit), jnp.float32)
    running_var = 1.0 + 0.05 * jax.nn.softplus(
        jax.random.normal(ks[9], (n, unit), jnp.float32))
    eps = 1e-5
    bn_scale = gamma * jax.lax.rsqrt(running_var + eps)
    bn_shift = beta - running_mean * bn_scale
    return (w_in, b_in, bn_scale, bn_shift, w_ch, b_ch, w_out, b_out)


def rescls_reference(x_ncl, params):
    """Pure-JAX f32 reference, mirrors the PyTorch forward (eval-mode BN)."""
    (w_in, b_in, bn_scale, bn_shift, w_ch, b_ch, w_out, b_out) = params
    x = jnp.einsum('bcl,oc->bol', x_ncl, w_in) + b_in[None, :, None]
    n = w_ch.shape[0]
    for i in range(n):
        d = x * bn_scale[i][None, :, None] + bn_shift[i][None, :, None]
        d = jnp.maximum(d, 0.0)
        d = jnp.einsum('bcl,oc->bol', d, w_ch[i]) + b_ch[i][None, :, None]
        x = x + d
    return jnp.einsum('bcl,oc->bol', x, w_out) + b_out[None, :, None]


if __name__ == "__main__":
    key = jax.random.PRNGKey(0)
    k_x, k_p = jax.random.split(key)

    # ResCls(n=2, intro=16, unit=32, outro=8, ndim=1)
    n, intro, unit, outro = 2, 16, 32, 8
    B, L = 2, 1024

    x = jax.random.normal(k_x, (B, intro, L), jnp.float32)
    params = init_params(k_p, n, intro, unit, outro)

    ref = rescls_reference(x, params)

    # f32 compute path, default tiling (tl auto-shrinks to 512 -> grid (2, 2)).
    out_f32 = jax.block_until_ready(
        rescls_forward(x, params, compute_dtype=jnp.float32))
    assert out_f32.shape == (B, outro, L)
    assert jnp.allclose(out_f32, ref, atol=1e-4, rtol=1e-4)

    # f32 compute path exercising batch-blocking + in-kernel lane sub-tiling:
    # grid (1, 1), nb=2 batch rows per step, 4 sub-tiles of 256 lanes.
    out_sub = jax.block_until_ready(
        rescls_forward(x, params, tl=1024, sub_tl=256, nb=2,
                       compute_dtype=jnp.float32, min_grid_steps=1))
    assert out_sub.shape == (B, outro, L)
    assert jnp.allclose(out_sub, ref, atol=1e-4, rtol=1e-4)

    # bf16 MXU path with bf16 output (recommended on v6e/v7x): looser tolerance.
    out_bf16 = jax.block_until_ready(
        rescls_forward(x, params, compute_dtype=jnp.bfloat16,
                       out_dtype=jnp.bfloat16))
    assert out_bf16.shape == (B, outro, L)
    assert out_bf16.dtype == jnp.bfloat16
    assert jnp.allclose(out_bf16.astype(jnp.float32), ref, atol=8e-2, rtol=8e-2)

    print("KERNEL_OK")
</pallas_src>

<mosaic_0001>
module attributes {stable_mosaic.version = 11 : i64} {
  func.func @_rescls_kernel(%arg0: i32, %arg1: i32, %arg2: memref<1x16x512xf32, #tpu.memory_space<vmem>>, %arg3: memref<32x16xf32, #tpu.memory_space<vmem>>, %arg4: memref<32x1xf32, #tpu.memory_space<vmem>>, %arg5: memref<2x32x1xf32, #tpu.memory_space<vmem>>, %arg6: memref<2x32x1xf32, #tpu.memory_space<vmem>>, %arg7: memref<2x32x32xf32, #tpu.memory_space<vmem>>, %arg8: memref<2x32x1xf32, #tpu.memory_space<vmem>>, %arg9: memref<8x32xf32, #tpu.memory_space<vmem>>, %arg10: memref<8x1xf32, #tpu.memory_space<vmem>>, %arg11: memref<1x8x512xf32, #tpu.memory_space<vmem>>) attributes {dimension_semantics = [#tpu.dimension_semantics<parallel>, #tpu.dimension_semantics<parallel>], iteration_bounds = array<i64: 2, 2>, scalar_prefetch = 0 : i64, scratch_operands = 0 : i64, tpu.core_type = #tpu.core_type<tc>, window_params = [{transform_indices = @transform_0, window_bounds = array<i64: 1, 16, 512>}, {pipeline_mode = #tpu.pipeline_mode<synchronous>, transform_indices = @transform_1, window_bounds = array<i64: 32, 16>}, {pipeline_mode = #tpu.pipeline_mode<synchronous>, transform_indices = @transform_2, window_bounds = array<i64: 32, 1>}, {pipeline_mode = #tpu.pipeline_mode<synchronous>, transform_indices = @transform_3, window_bounds = array<i64: 2, 32, 1>}, {pipeline_mode = #tpu.pipeline_mode<synchronous>, transform_indices = @transform_4, window_bounds = array<i64: 2, 32, 1>}, {pipeline_mode = #tpu.pipeline_mode<synchronous>, transform_indices = @transform_5, window_bounds = array<i64: 2, 32, 32>}, {pipeline_mode = #tpu.pipeline_mode<synchronous>, transform_indices = @transform_6, window_bounds = array<i64: 2, 32, 1>}, {pipeline_mode = #tpu.pipeline_mode<synchronous>, transform_indices = @transform_7, window_bounds = array<i64: 8, 32>}, {pipeline_mode = #tpu.pipeline_mode<synchronous>, transform_indices = @transform_8, window_bounds = array<i64: 8, 1>}, {transform_indices = @transform_9, window_bounds = array<i64: 1, 8, 512>}]} {
    %c0 = arith.constant 0 : index
    %c0_0 = arith.constant 0 : index
    %0 = vector.load %arg3[%c0, %c0_0] : memref<32x16xf32, #tpu.memory_space<vmem>>, vector<32x16xf32>
    %c0_1 = arith.constant 0 : index
    %c0_2 = arith.constant 0 : index
    %1 = vector.load %arg4[%c0_1, %c0_2] : memref<32x1xf32, #tpu.memory_space<vmem>>, vector<32x1xf32>
    %c0_3 = arith.constant 0 : index
    %c0_4 = arith.constant 0 : index
    %2 = vector.load %arg9[%c0_3, %c0_4] : memref<8x32xf32, #tpu.memory_space<vmem>>, vector<8x32xf32>
    %c0_5 = arith.constant 0 : index
    %c0_6 = arith.constant 0 : index
    %3 = vector.load %arg10[%c0_5, %c0_6] : memref<8x1xf32, #tpu.memory_space<vmem>>, vector<8x1xf32>
    %c0_7 = arith.constant 0 : index
    %c0_8 = arith.constant 0 : index
    %c0_9 = arith.constant 0 : index
    %4 = vector.load %arg2[%c0_7, %c0_8, %c0_9] : memref<1x16x512xf32, #tpu.memory_space<vmem>>, vector<1x16x512xf32>
    %5 = vector.shape_cast %4 : vector<1x16x512xf32> to vector<16x512xf32>
    %cst = arith.constant dense<0.000000e+00> : vector<32x512xf32>
    %6 = tpu.matmul %0, %5, %cst {dimension_numbers = #tpu.dot_dimension_numbers<[1], [0], [0], [1], [0, 0, 1, 1], [], []>} : vector<32x16xf32>, vector<16x512xf32>, vector<32x512xf32> -> vector<32x512xf32>
    %7 = vector.broadcast %1 : vector<32x1xf32> to vector<32x512xf32>
    %8 = arith.addf %6, %7 : vector<32x512xf32>
    %c0_10 = arith.constant 0 : index
    %c0_11 = arith.constant 0 : index
    %c0_12 = arith.constant 0 : index
    %9 = vector.load %arg5[%c0_10, %c0_11, %c0_12] : memref<2x32x1xf32, #tpu.memory_space<vmem>>, vector<1x32x1xf32>
    %10 = vector.shape_cast %9 : vector<1x32x1xf32> to vector<32x1xf32>
    %11 = vector.broadcast %10 : vector<32x1xf32> to vector<32x512xf32>
    %12 = arith.mulf %8, %11 : vector<32x512xf32>
    %c0_13 = arith.constant 0 : index
    %c0_14 = arith.constant 0 : index
    %c0_15 = arith.constant 0 : index
    %13 = vector.load %arg6[%c0_13, %c0_14, %c0_15] : memref<2x32x1xf32, #tpu.memory_space<vmem>>, vector<1x32x1xf32>
    %14 = vector.shape_cast %13 : vector<1x32x1xf32> to vector<32x1xf32>
    %15 = vector.broadcast %14 : vector<32x1xf32> to vector<32x512xf32>
    %16 = arith.addf %12, %15 : vector<32x512xf32>
    %cst_16 = arith.constant 0.000000e+00 : f32
    %17 = vector.broadcast %cst_16 : f32 to vector<32x512xf32>
    %18 = arith.maximumf %16, %17 : vector<32x512xf32>
    %c0_17 = arith.constant 0 : index
    %c0_18 = arith.constant 0 : index
    %c0_19 = arith.constant 0 : index
    %19 = vector.load %arg7[%c0_17, %c0_18, %c0_19] : memref<2x32x32xf32, #tpu.memory_space<vmem>>, vector<1x32x32xf32>
    %20 = vector.shape_cast %19 : vector<1x32x32xf32> to vector<32x32xf32>
    %cst_20 = arith.constant dense<0.000000e+00> : vector<32x512xf32>
    %21 = tpu.matmul %20, %18, %cst_20 {dimension_numbers = #tpu.dot_dimension_numbers<[1], [0], [0], [1], [0, 0, 1, 1], [], []>} : vector<32x32xf32>, vector<32x512xf32>, vector<32x512xf32> -> vector<32x512xf32>
    %22 = arith.addf %8, %21 : vector<32x512xf32>
    %c0_21 = arith.constant 0 : index
    %c0_22 = arith.constant 0 : index
    %c0_23 = arith.constant 0 : index
    %23 = vector.load %arg8[%c0_21, %c0_22, %c0_23] : memref<2x32x1xf32, #tpu.memory_space<vmem>>, vector<1x32x1xf32>
    %24 = vector.shape_cast %23 : vector<1x32x1xf32> to vector<32x1xf32>
    %25 = vector.broadcast %24 : vector<32x1xf32> to vector<32x512xf32>
    %26 = arith.addf %22, %25 : vector<32x512xf32>
    %c1 = arith.constant 1 : index
    %c0_24 = arith.constant 0 : index
    %c0_25 = arith.constant 0 : index
    %27 = vector.load %arg5[%c1, %c0_24, %c0_25] : memref<2x32x1xf32, #tpu.memory_space<vmem>>, vector<1x32x1xf32>
    %28 = vector.shape_cast %27 : vector<1x32x1xf32> to vector<32x1xf32>
    %29 = vector.broadcast %28 : vector<32x1xf32> to vector<32x512xf32>
    %30 = arith.mulf %26, %29 : vector<32x512xf32>
    %c1_26 = arith.constant 1 : index
    %c0_27 = arith.constant 0 : index
    %c0_28 = arith.constant 0 : index
    %31 = vector.load %arg6[%c1_26, %c0_27, %c0_28] : memref<2x32x1xf32, #tpu.memory_space<vmem>>, vector<1x32x1xf32>
    %32 = vector.shape_cast %31 : vector<1x32x1xf32> to vector<32x1xf32>
    %33 = vector.broadcast %32 : vector<32x1xf32> to vector<32x512xf32>
    %34 = arith.addf %30, %33 : vector<32x512xf32>
    %cst_29 = arith.constant 0.000000e+00 : f32
    %35 = vector.broadcast %cst_29 : f32 to vector<32x512xf32>
    %36 = arith.maximumf %34, %35 : vector<32x512xf32>
    %c1_30 = arith.constant 1 : index
    %c0_31 = arith.constant 0 : index
    %c0_32 = arith.constant 0 : index
    %37 = vector.load %arg7[%c1_30, %c0_31, %c0_32] : memref<2x32x32xf32, #tpu.memory_space<vmem>>, vector<1x32x32xf32>
    %38 = vector.shape_cast %37 : vector<1x32x32xf32> to vector<32x32xf32>
    %cst_33 = arith.constant dense<0.000000e+00> : vector<32x512xf32>
    %39 = tpu.matmul %38, %36, %cst_33 {dimension_numbers = #tpu.dot_dimension_numbers<[1], [0], [0], [1], [0, 0, 1, 1], [], []>} : vector<32x32xf32>, vector<32x512xf32>, vector<32x512xf32> -> vector<32x512xf32>
    %40 = arith.addf %26, %39 : vector<32x512xf32>
    %c1_34 = arith.constant 1 : index
    %c0_35 = arith.constant 0 : index
    %c0_36 = arith.constant 0 : index
    %41 = vector.load %arg8[%c1_34, %c0_35, %c0_36] : memref<2x32x1xf32, #tpu.memory_space<vmem>>, vector<1x32x1xf32>
    %42 = vector.shape_cast %41 : vector<1x32x1xf32> to vector<32x1xf32>
    %43 = vector.broadcast %42 : vector<32x1xf32> to vector<32x512xf32>
    %44 = arith.addf %40, %43 : vector<32x512xf32>
    %cst_37 = arith.constant dense<0.000000e+00> : vector<8x512xf32>
    %45 = tpu.matmul %2, %44, %cst_37 {dimension_numbers = #tpu.dot_dimension_numbers<[1], [0], [0], [1], [0, 0, 1, 1], [], []>} : vector<8x32xf32>, vector<32x512xf32>, vector<8x512xf32> -> vector<8x512xf32>
    %46 = vector.broadcast %3 : vector<8x1xf32> to vector<8x512xf32>
    %47 = arith.addf %45, %46 : vector<8x512xf32>
    %c0_38 = arith.constant 0 : index
    %c0_39 = arith.constant 0 : index
    %c0_40 = arith.constant 0 : index
    %48 = vector.load %arg11[%c0_38, %c0_39, %c0_40] : memref<1x8x512xf32, #tpu.memory_space<vmem>>, vector<1x8x512xf32>
    %49 = vector.shape_cast %48 : vector<1x8x512xf32> to vector<8x512xf32>
    %50 = vector.shape_cast %47 : vector<8x512xf32> to vector<1x8x512xf32>
    tpu.vector_store %arg11[%c0_38, %c0_39, %c0_40], %50 {strides = array<i32>} : memref<1x8x512xf32, #tpu.memory_space<vmem>>, vector<1x8x512xf32>,
    return
  }
  func.func @transform_0(%arg0: i32, %arg1: i32) -> (i32, i32, i32) {
    %c0_i32 = arith.constant 0 : i32
    %c0_i32_0 = arith.constant 0 : i32
    return %arg0, %c0_i32, %arg1 : i32, i32, i32
  }
  func.func @transform_1(%arg0: i32, %arg1: i32) -> (i32, i32) {
    %c0_i32 = arith.constant 0 : i32
    %c0_i32_0 = arith.constant 0 : i32
    %c0_i32_1 = arith.constant 0 : i32
    return %c0_i32, %c0_i32_0 : i32, i32
  }
  func.func @transform_2(%arg0: i32, %arg1: i32) -> (i32, i32) {
    %c0_i32 = arith.constant 0 : i32
    %c0_i32_0 = arith.constant 0 : i32
    %c0_i32_1 = arith.constant 0 : i32
    return %c0_i32, %c0_i32_0 : i32, i32
  }
  func.func @transform_3(%arg0: i32, %arg1: i32) -> (i32, i32, i32) {
    %c0_i32 = arith.constant 0 : i32
    %c0_i32_0 = arith.constant 0 : i32
    %c0_i32_1 = arith.constant 0 : i32
    %c0_i32_2 = arith.constant 0 : i32
    return %c0_i32, %c0_i32_0, %c0_i32_1 : i32, i32, i32
  }
  func.func @transform_4(%arg0: i32, %arg1: i32) -> (i32, i32, i32) {
    %c0_i32 = arith.constant 0 : i32
    %c0_i32_0 = arith.constant 0 : i32
    %c0_i32_1 = arith.constant 0 : i32
    %c0_i32_2 = arith.constant 0 : i32
    return %c0_i32, %c0_i32_0, %c0_i32_1 : i32, i32, i32
  }
  func.func @transform_5(%arg0: i32, %arg1: i32) -> (i32, i32, i32) {
    %c0_i32 = arith.constant 0 : i32
    %c0_i32_0 = arith.constant 0 : i32
    %c0_i32_1 = arith.constant 0 : i32
    %c0_i32_2 = arith.constant 0 : i32
    return %c0_i32, %c0_i32_0, %c0_i32_1 : i32, i32, i32
  }
  func.func @transform_6(%arg0: i32, %arg1: i32) -> (i32, i32, i32) {
    %c0_i32 = arith.constant 0 : i32
    %c0_i32_0 = arith.constant 0 : i32
    %c0_i32_1 = arith.constant 0 : i32
    %c0_i32_2 = arith.constant 0 : i32
    return %c0_i32, %c0_i32_0, %c0_i32_1 : i32, i32, i32
  }
  func.func @transform_7(%arg0: i32, %arg1: i32) -> (i32, i32) {
    %c0_i32 = arith.constant 0 : i32
    %c0_i32_0 = arith.constant 0 : i32
    %c0_i32_1 = arith.constant 0 : i32
    return %c0_i32, %c0_i32_0 : i32, i32
  }
  func.func @transform_8(%arg0: i32, %arg1: i32) -> (i32, i32) {
    %c0_i32 = arith.constant 0 : i32
    %c0_i32_0 = arith.constant 0 : i32
    %c0_i32_1 = arith.constant 0 : i32
    return %c0_i32, %c0_i32_0 : i32, i32
  }
  func.func @transform_9(%arg0: i32, %arg1: i32) -> (i32, i32, i32) {
    %c0_i32 = arith.constant 0 : i32
    %c0_i32_0 = arith.constant 0 : i32
    return %arg0, %c0_i32, %arg1 : i32, i32, i32
  }
}

</mosaic_0001>

<bundles_post_ra>
// kernel: tpu_custom_call.1
= control target key start
LH: loop header
LB: loop body
LE: loop exit
PB: predicated region body
PF: predicated region fallthrough
CT: control target
= control target key end

     0   :  { %s2466_s0 = inlined_call_operand.vmem [shape: f32[2,16,1024], index: 0, kind: input, shape index: {}]   ;;  %s2467_s1 = inlined_call_operand.vmem [shape: f32[32,16], index: 1, kind: input, shape index: {}]   ;;  %s2468_s2 = inlined_call_operand.vmem [shape: f32[32,1], index: 2, kind: input, shape index: {}]   ;;  %s2469_s3 = inlined_call_operand.vmem [shape: f32[2,32,1], index: 3, kind: input, shape index: {}]   ;;  %s2470_s4 = inlined_call_operand.vmem [shape: f32[2,32,1], index: 4, kind: input, shape index: {}]   ;;  %s2471_s5 = inlined_call_operand.hbm [shape: f32[2,32,32], index: 5, kind: input, shape index: {}]   ;;  %s2472_s6 = inlined_call_operand.vmem [shape: f32[2,32,1], index: 6, kind: input, shape index: {}]   ;;  %s2473_s7 = inlined_call_operand.vmem [shape: f32[8,32], index: 7, kind: input, shape index: {}]   ;;  %s2474_s8 = inlined_call_operand.vmem [shape: f32[8,1], index: 8, kind: input, shape index: {}]   ;;  %s2475_s9 = inlined_call_operand.hbm [shape: f32[2,8,1024], index: 9, kind: output, shape index: {}]  }
   0x1   :  { %2487 = sst [smem:[#allocation15_spill]] %s2473_s7 }
   0x2   :  { %2488 = sst [smem:[#allocation16_spill]] %s2475_s9 }
   0x3   :  { %14 = vsyncpa [#allocation4], 0 }
   0x4   :  { %15 = vsyncpa [#allocation5], 0 }
   0x5   :  { %17 = vsyncpa [#allocation5 + $0x1], 0  ;;  %s1976_s30 = smov 0   ;;  %s1978_s10 = smov 0  }
   0x6   :  { %s1980_s11 = smov 0   ;;  %s1982_s12 = smov 0  }
   0x7   :  { %s1984_s13 = smov 0   ;;  %s1986_s14 = smov 0  }
   0x8   :  { %s1988_s15 = smov 0   ;;  %s1990_s16 = smov 0  }
   0x9 LB: > { %2489 = sst [smem:[#allocation9_spill]] %s1890_s30  ;;  %s1591_s17 = sadd.s32 4294967295, %s1918_s16   ;;  %s1918_s16 = sphi %s1990_s16, %s23_s16   ;;  %s1914_s15 = sphi %s1988_s15, %s2521_s15   ;;  %s1910_s14 = sphi %s1986_s14, %s2520_s14   ;;  %s1906_s13 = sphi %s1984_s13, %s2519_s13   ;;  %s1902_s12 = sphi %s1982_s12, %s2518_s12   ;;  %s1898_s11 = sphi %s1980_s11, %s2517_s11   ;;  %s1894_s10 = sphi %s1978_s10, %s2516_s10   ;;  %s1890_s30 = sphi %s1976_s30, %s2515_s30  }
   0xa   : > { %s1592_s18 = sadd.s32 4294967294, %s1918_s16   ;;  %s32_s19 = sadd.s32 1, %s1910_s14 }
   0xb   : > { %s35_s20 = sadd.s32 1, %s1914_s15  ;;  %p33_p0 = scmp.ge.s32.totalorder %s32_s19, 2 }
   0xc   : > { %s44_s21 = sadd.s32 1, %s1898_s11  ;;  %p51_p1 = scmp.ne.s32.totalorder %s1898_s11, %s1894_s10 }
   0xd   : > { %p52_p2 = scmp.eq.s32.totalorder %s1918_s16, 0  ;;  %s2523_s19 = smov (%p33_p0, %s32_s19), 0 }
   0xe   : > { %2490 = sst [smem:[#allocation10_spill]] %s2523_s19  ;;  %s2525_s20 = smov (!%p33_p0, %s35_s20), %s1914_s15 }
   0xf   : > { %s40_s22 = ssub.s32 %s1910_s14, %s2523_s19  ;;  %p2029_p3 = por %p52_p2, %p51_p1 }
  0x10   : > { %p37_p4 = scmp.ge.s32.totalorder %s2525_s20, 2  ;;  %p251_p5 = scmp.eq.s32.totalorder %s1591_s17, 3 }
  0x11   : > { %s2491_s23 = scalar_select %p2029_p3, 1, 0 }
  0x12   : > { %p256_p6 = scmp.ne.s32.totalorder %s1894_s10, %s1890_s30  ;;  %p257_p7 = scmp.eq.s32.totalorder %s1592_s18, 3 }
  0x13   : > { %s2527_s20 = smov (%p37_p4, %s2525_s20), 0  ;;  %p2037_p8 = por %p251_p5, %p51_p1 }
  0x14   : > { %2492 = sst [smem:[#allocation11_spill]] %s2527_s20  ;;  %p2041_p9 = por %p257_p7, %p256_p6 }
  0x15   : > { %s2493_s24 = scalar_select %p2037_p8, 1, 0 }
  0x16   : > { %s2495_s25 = scalar_select %p2041_p9, 1, 0 }
  0x17   : > { %2494 = sst [smem:[#allocation12_spill]] %s2493_s24  ;;  %s39_s26 = ssub.s32 %s1914_s15, %s2527_s20 }
  0x18   : > { %2496 = sst [smem:[#allocation13_spill]] %s2495_s25  ;;  %p1593_p10 = scmp.ge.s32.totalorder %s1918_s16, 1 }
  0x19   : > { %s41_s27 = sor.u32 %s40_s22, %s39_s26  ;;  %p264_p11 = scmp.lt.s32.totalorder %s1918_s16, 5 }
  0x1a   : > { %p42_p12 = scmp.eq.s32.totalorder %s41_s27, 0  ;;  %p2053_p0 = scmp.eq.s32.totalorder %s1591_s17, 0 }
  0x1b   : > { %p2049_p13 = pnand %p1593_p10, %p264_p11  ;;  %s1920_s19 = smov [#allocation3]  }
  0x1c   : > { %s2498_s29 = scalar_select %p2053_p0, 1, 0 }
  0x1d   : > { %s2497_s28 = scalar_select %p2049_p13, 1, 0 }
  0x1e   : > { %s2058_s18 = scalar_select %p42_p12, %s1898_s11, %s44_s21  }
  0x1f   : > { %p1710_p1 = pneg %p2049_p13  ;;  %s288_s20 = sshll.u32 %s1920_s19, 4  ;;  %s289_s20 = int_to_ptr.vmem [resolvable:$true] %s288_s20 }
  0x20   : > { %2499 = sst [smem:[#allocation14_spill]] %s2058_s18  ;;  %s1792_s17 = scalar_lea.hbm %s2471_s5, 1024 }
  0x21   : > { %p2064_p2 = pnand %p2053_p0, %p1710_p1  ;;  %p1793_p4 = scmp.ne.s32.totalorder %s2471_s5, %s1792_s17 }
  0x22   : > { %p1799_p10 = scmp.lt.u32.totalorder %s1792_s17, %s2471_s5 }
  0x23   : > { %p1794_p5 = pneg %p2064_p2 }
  0x25   : > { %p1795_p6 = pnand %p1794_p5, %p1793_p4 }
  0x27   : > { %p1796_p7 = pneg %p1795_p6 }
  0x29   : > { %p1801_p11 = pnand %p1799_p10, %p1796_p7 }
  0x2b   : > { %1804 = shalt.err (!%p1801_p11)
}
  0x2c   : > { %s1805_s18 = scalar_lea.vmem %s289_s20, 1024  ;;  %p1813_p8 = scmp.lt.s32.totalorder %s289_s20, %s289_s20 }
  0x2d   : > { %p1806_p12 = scmp.ne.s32.totalorder %s289_s20, %s1805_s18  ;;  %p1814_p0 = scmp.lt.s32.totalorder %s1805_s18, %s1805_s18 }
  0x2f   : > { %p1808_p1 = pnand %p1806_p12, %p1794_p5  ;;  %p1815_p13 = por %p1814_p0, %p1813_p8 }
  0x31   : > { %p1809_p9 = pneg %p1808_p1 }
  0x33   : > { %p1816_p3 = pnand %p1815_p13, %p1809_p9 }
  0x35   : > { %1819 = shalt.err (!%p1816_p3)
}
  0x36   : > { %s1921_s30 = smov 128   ;;  %s1922_s25 = smov 8  }
  0x37   : > { %1713 = dma.hbm_to_vmem [thread:$0]  (!%p2064_p2), %s2471_s5, 1024, %s289_s20, [#allocation4], %s1921_s30, %s1921_s30, %s1922_s25  }
  0x38   : > { %p1595_p4 = scmp.ge.s32.totalorder %s1918_s16, 4 }
  0x39   : > { %p2501_p6 = scmp.ne.s32.totalorder (!%p1595_p4), %s2491_s23, 0 }
  0x3a   : > { %307 = sbr.rel (%p1595_p4) target bundleno = 76 (0x4c), region = 48 }
  0x41   : > { %310 = sbr.rel (!%p2501_p6) target bundleno = 76 (0x4c), region = 52  ;;  %s312_s18 = sand.u32 (%p2501_p6), 1, %s1898_s11  }
  0x42   : > { %s1597_s17 = sshll.u32 (%p2501_p6), %s1910_s14, 2  ;;  %s1596_s19 = sshll.u32 (%p2501_p6), %s312_s18, 6 }
  0x43   : > { %s1598_s21 = sshll.u32 (%p2501_p6), %s1914_s15, 4  ;;  %s314_s20 = scalar_lea.vmem (%p2501_p6), [#allocation2], %s1596_s19 }
  0x44   : > { %s317_s9 = sadd.s32 (%p2501_p6), %s1598_s21, %s1597_s17 }
  0x45   : > { %s1599_s24 = sshll.u32 (%p2501_p6), %s317_s9, 3 }
  0x46   : > { %s319_s26 = scalar_lea.vmem (%p2501_p6), %s2466_s0, %s1599_s24 }
  0x47   : > { %v332_v0 = vld [vmem:[%s319_s26] sm:$0xff] (%p2501_p6)  ;;  %v334_v1 = vld [vmem:[%s319_s26 + $0x8] sm:$0xff] (%p2501_p6)  ;;  %v336_v2 = vld [vmem:[%s319_s26 + $0x10] sm:$0xff] (%p2501_p6) }
  0x48   : > { %333 = vst [vmem:[%s314_s20] sm:$0xff] %v332_v0  ;;  %335 = vst [vmem:[%s314_s20 + $0x8] sm:$0xff] %v334_v1  ;;  %v338_v3 = vld [vmem:[%s319_s26 + $0x18] sm:$0xff]  ;;  %v340_v4 = vld [vmem:[%s319_s26 + $0x40] sm:$0xff] }
  0x49   : > { %337 = vst [vmem:[%s314_s20 + $0x10] sm:$0xff] %v336_v2  ;;  %v342_v5 = vld [vmem:[%s319_s26 + $0x48] sm:$0xff]  ;;  %339 = vst [vmem:[%s314_s20 + $0x18] sm:$0xff] %v338_v3  ;;  %v344_v6 = vld [vmem:[%s319_s26 + $0x50] sm:$0xff] }
  0x4a   : > { %341 = vst [vmem:[%s314_s20 + $0x20] sm:$0xff] %v340_v4  ;;  %343 = vst [vmem:[%s314_s20 + $0x28] sm:$0xff] %v342_v5  ;;  %v346_v7 = vld [vmem:[%s319_s26 + $0x58] sm:$0xff] }
  0x4b   : > { %345 = vst [vmem:[%s314_s20 + $0x30] sm:$0xff] %v344_v6  ;;  %347 = vst [vmem:[%s314_s20 + $0x38] sm:$0xff] %v346_v7 }
  0x4c PF: > { %p2502_p3 = scmp.ne.s32.totalorder %s2497_s28, 0 }
  0x4d   : > { %s2096_s7 = sand.u32 (!%p2502_p3), 1, %s1894_s10   ;;  %p2503_p8 = scmp.ne.s32.totalorder (!%p2502_p3), %s2498_s29, 0 }
  0x4e   : > { %356 = sbr.rel (%p2502_p3) target bundleno = 1040 (0x410), region = 75  ;;  %s1601_s9 = sshll.u32 (!%p2502_p3), %s2096_s7, 6 }
  0x4f   : > { %s361_s23 = scalar_lea.vmem (!%p2502_p3), [#allocation2], %s1601_s9 }
  0x55   : > { %1881 = dma.done.wait (%p2503_p8), [#allocation4], 1024  }
  0x56   : > { %1883 = vsyncadd (%p2503_p8), [#allocation4], 4294966272  ;;  %v1923_v8 = vmov 0.0   ;;  %v1924_v9 = vmov 0   ;;  %v411_v10 = vld [vmem:[%s361_s23 + $0x8] sm:$0xff]  ;;  %v413_v12 = vld [vmem:[%s361_s23 + $0x18] sm:$0xff] }
  0x57   : > { %515 = vmatprep.mubr.f32.mxu0 %v1923_v8  ;;  %604 = vmatprep.mubr.f32.mxu1 %v1923_v8  ;;  %v415_v11 = vld [vmem:[%s361_s23 + $0x28] sm:$0xff]  ;;  %v417_v14 = vld [vmem:[%s361_s23 + $0x38] sm:$0xff]  ;;  %v410_v15 = vld [vmem:[%s361_s23] sm:$0xff]  ;;  %vm438_vm0 = vcmask 130048   ;;  %vm729_vm1 = vcmask 261120   ;;  %s2504_s19 = sld [smem:[#allocation15_spill]] }
  0x58   : > { %1790 = vset.pattern.permute.xlu0 %v1924_v9  ;;  %1791 = vset.pattern.permute.xlu1 %v1924_v9  ;;  %v1648_v13 = vpack.c.bf16 %v415_v11, %v411_v10  ;;  %v414_v16 = vld [vmem:[%s361_s23 + $0x20] sm:$0xff]  ;;  %v1652_v17 = vpack.c.bf16 %v417_v14, %v413_v12  ;;  %v412_v19 = vld [vmem:[%s361_s23 + $0x10] sm:$0xff]  ;;  %v405_v25 = vld [vmem:[%s2468_s2 + $0x8] sm:$0xff]  ;;  %s1603_s21 = sshll.u32 %s2096_s7, 5  ;;  %s1643_s22 = sshll.u32 %s1902_s12, 2 }
  0x59   : > { %v1650_v18 = vpack.c.bf16 %v414_v16, %v410_v15  ;;  %v416_v20 = vld [vmem:[%s361_s23 + $0x30] sm:$0xff]  ;;  %v400_v22 = vld [vmem:[%s2467_s1] sm:$0xff]  ;;  %v630_v26 = vld [vmem:[%s2469_s3 + $0x8] sm:$0xff]  ;;  %s1644_s26 = sshll.u32 %s1906_s13, 3  ;;  %s397_s23 = scalar_lea.vmem [#allocation6], %s1603_s21 }
  0x5a   : > { %1649 = vmatprep.subr.bf16.mxu0 %v1648_v13  ;;  %v1654_v21 = vpack.c.bf16 %v416_v20, %v412_v19  ;;  %1653 = vmatprep.subr.bf16.mxu1 %v1652_v17  ;;  %v404_v23 = vld [vmem:[%s2468_s2] sm:$0xff]  ;;  %v401_v27 = vld [vmem:[%s2467_s1 + $0x8] sm:$0xff]  ;;  %v406_v28 = vld [vmem:[%s2468_s2 + $0x10] sm:$0xff]  ;;  %s1493_s20 = sadd.s32 %s1644_s26, %s1643_s22  ;;  %s1497_s24 = sshll.u32 %s397_s23, 4  ;;  %s2414_s24 = int_to_ptr.vmem [resolvable:$true] %s1497_s24 }
  0x5b   : > { %1651 = vmatpush1.bf16.msra.mxu0 %v1650_v18  ;;  %v629_v24 = vld [vmem:[%s2469_s3] sm:$0xff]  ;;  %420 = vperm.xlu0 %1790, %v404_v23   ;;  %v407_v29 = vld [vmem:[%s2468_s2 + $0x18] sm:$0xff]  ;;  %v402_v30 = vld [vmem:[%s2467_s1 + $0x10] sm:$0xff]  ;;  %s1645_s9 = sshll.u32 %s1493_s20, 7  ;;  %s2505_s28 = sld [smem:[#allocation12_spill]] }
  0x5c   : > { %1655 = vmatpush1.bf16.msra.mxu1 %v1654_v21  ;;  %635 = vperm.xlu1 %1791, %v629_v24   ;;  %v669_v31 = vld [vmem:[%s2470_s4] sm:$0xff]  ;;  %v670_v32 = vld [vmem:[%s2470_s4 + $0x8] sm:$0xff]  ;;  %v403_v33 = vld [vmem:[%s2467_s1 + $0x18] sm:$0xff]  ;;  %s2506_s12 = sld [smem:[#allocation16_spill]]  ;;  %s1481_s27 = scalar_lea.sflag [#allocation5], %s2096_s7 }
  0x5d   : > { %v631_v34 = vld [vmem:[%s2469_s3 + $0x10] sm:$0xff]  ;;  %v632_v35 = vld [vmem:[%s2469_s3 + $0x18] sm:$0xff]  ;;  %v936_v38 = vld [vmem:[%s2472_s6] sm:$0xff]  ;;  %s1820_s18 = scalar_lea.vmem %s2414_s24, 512  ;;  %s1925_s17 = smov [#allocation6]  }
  0x5e   : > { %1604 = vmatmul.mubr.msk.f32.vlgmr.msra.gmra.mrb[0].mxu0 %vm438_vm0, %v400_v22  ;;  %v671_v36 = vld [vmem:[%s2470_s4 + $0x10] sm:$0xff]  ;;  %v672_v37 = vld [vmem:[%s2470_s4 + $0x18] sm:$0xff]  ;;  %v937_v39 = vld [vmem:[%s2472_s6 + $0x8] sm:$0xff]  ;;  %p1821_p9 = scmp.ne.s32.totalorder %s2414_s24, %s1820_s18 }
  0x5f   : > { %1608 = vmatmul.mubr.msk.f32.vlgmr.msra.gmra.mrb[0].mxu1 %vm438_vm0, %v400_v22  ;;  %521 = vmatprep.mubr.f32.mxu0 %v1923_v8  ;;  %v1620_v40 = vld [vmem:[%s2469_s3 + $0x20] sm:$0xff]  ;;  %v1621_v41 = vld [vmem:[%s2469_s3 + $0x28] sm:$0xff]  ;;  %v938_v42 = vld [vmem:[%s2472_s6 + $0x10] sm:$0xff] }
  0x60   : > { %610 = vmatprep.mubr.f32.mxu1 %v1923_v8  ;;  %425 = vperm.xlu0 %1790, %v405_v25   ;;  %v939_v43 = vld [vmem:[%s2472_s6 + $0x18] sm:$0xff]  ;;  %v1624_v44 = vld [vmem:[%s2470_s4 + $0x20] sm:$0xff]  ;;  %v1625_v45 = vld [vmem:[%s2470_s4 + $0x28] sm:$0xff] }
  0x61   : > { %640 = vperm.xlu1 %1791, %v630_v26   ;;  %v1622_v46 = vld [vmem:[%s2469_s3 + $0x30] sm:$0xff]  ;;  %v1623_v47 = vld [vmem:[%s2469_s3 + $0x38] sm:$0xff]  ;;  %v1636_v50 = vld [vmem:[%s2472_s6 + $0x20] sm:$0xff]  ;;  %p2508_p13 = scmp.ne.s32.totalorder %s2505_s28, 0 }
  0x62   : > { %1605 = vmatmul.mubr.msk.f32.gmra.mrb[2].mxu0 %vm438_vm0, %v401_v27  ;;  %v1626_v48 = vld [vmem:[%s2470_s4 + $0x30] sm:$0xff]  ;;  %v1627_v49 = vld [vmem:[%s2470_s4 + $0x38] sm:$0xff]  ;;  %v1637_v51 = vld [vmem:[%s2472_s6 + $0x28] sm:$0xff]  ;;  %s2507_s25 = smov %s2506_s12  ;;  %s2412_s13 = scalar_lea.hbm %s2506_s12, %s1645_s9 }
  0x63   : > { %1609 = vmatmul.mubr.msk.f32.gmra.mrb[2].mxu1 %vm438_vm0, %v401_v27  ;;  %527 = vmatprep.mubr.f32.mxu0 %v1923_v8  ;;  %v1638_v52 = vld [vmem:[%s2472_s6 + $0x30] sm:$0xff]  ;;  %v1639_v53 = vld [vmem:[%s2472_s6 + $0x38] sm:$0xff]  ;;  %v409_v54 = vld [vmem:[%s2474_s8] sm:$0xff]  ;;  %p1822_p0 = pnand %p1821_p9, %p2508_p13 }
  0x64   : > { %616 = vmatprep.mubr.f32.mxu1 %v1923_v8  ;;  %430 = vperm.xlu0 %1790, %v406_v28  }
  0x65   : > { %435 = vperm.xlu1 %1791, %v407_v29   ;;  %p1823_p2 = pneg %p1822_p0 }
  0x66   : > { %1606 = vmatmul.mubr.msk.f32.gmra.mrb[4].mxu0 %vm438_vm0, %v402_v30 }
  0x67   : > { %1610 = vmatmul.mubr.msk.f32.gmra.mrb[4].mxu1 %vm438_vm0, %v402_v30  ;;  %533 = vmatprep.mubr.f32.mxu0 %v1923_v8 }
  0x68   : > { %622 = vmatprep.mubr.f32.mxu1 %v1923_v8  ;;  %675 = vperm.xlu0 %1790, %v669_v31  }
  0x69   : > { %680 = vperm.xlu1 %1791, %v670_v32  }
  0x6a   : > { %1607 = vmatmul.mubr.msk.f32.gmra.mrb[6].mxu0 %vm438_vm0, %v403_v33 }
  0x6b   : > { %1611 = vmatmul.mubr.msk.f32.gmra.mrb[6].mxu1 %vm438_vm0, %v403_v33  ;;  %806 = vmatprep.mubr.f32.mxu0 %v1923_v8 }
  0x6c   : > { %645 = vperm.xlu0 %1790, %v631_v34   ;;  %895 = vmatprep.mubr.f32.mxu1 %v1923_v8 }
  0x6d   : > { %650 = vperm.xlu1 %1791, %v632_v35  }
  0x70   : > { %685 = vperm.xlu0 %1790, %v671_v36  }
  0x71   : > { %690 = vperm.xlu1 %1791, %v672_v37  }
  0x74   : > { %942 = vperm.xlu0 %1790, %v936_v38  }
  0x75   : > { %947 = vperm.xlu1 %1791, %v937_v39  }
  0x78   : > { %983 = vperm.xlu0 %1790, %v1620_v40  }
  0x79   : > { %988 = vperm.xlu1 %1791, %v1621_v41  }
  0x7c   : > { %952 = vperm.xlu0 %1790, %v938_v42  }
  0x7d   : > { %957 = vperm.xlu1 %1791, %v939_v43  }
  0x80   : > { %1024 = vperm.xlu0 %1790, %v1624_v44  }
  0x81   : > { %1029 = vperm.xlu1 %1791, %v1625_v45  }
  0x84   : > { %993 = vperm.xlu0 %1790, %v1622_v46  }
  0x85   : > { %998 = vperm.xlu1 %1791, %v1623_v47  }
  0x88   : > { %1034 = vperm.xlu0 %1790, %v1626_v48  }
  0x89   : > { %1039 = vperm.xlu1 %1791, %v1627_v49  }
  0x8c   : > { %1292 = vperm.xlu0 %1790, %v1636_v50  }
  0x8d   : > { %1297 = vperm.xlu1 %1791, %v1637_v51  }
  0x90   : > { %1302 = vperm.xlu0 %1790, %v1638_v52  }
  0x91   : > { %1307 = vperm.xlu1 %1791, %v1639_v53  }
  0x94   : > { %1328 = vperm.xlu0 %1790, %v409_v54  }
  0xda   : > { %v421_v55 = vpop.permute.xlu0 %420 }
  0xdb   : > { %v636_v56 = vpop.permute.xlu1 %635 }
  0xdf   : > { %v426_v57 = vpop.permute.xlu0 %425 }
  0xe0   : > { %v641_v58 = vpop.permute.xlu1 %640 }
  0xe3   : > { %v431_v59 = vpop.permute.xlu0 %430 }
  0xe4   : > { %v2220_v60 = vpop.permute.xlu1 %435 }
  0xe7   : > { %v676_v1 = vpop.permute.xlu0 %675 }
  0xe8   : > { %v681_v6 = vpop.permute.xlu1 %680 }
  0xeb   : > { %v646_v21 = vpop.permute.xlu0 %645 }
  0xec   : > { %v651_v37 = vpop.permute.xlu1 %650 }
 0x131   : > { %v517_v61 = vpop.f32.mrb[0].mxu0 }
 0x132   : > { %v2222_v62 = vadd.f32 %v517_v61, %v421_v55  ;;  %v606_v63 = vpop.f32.mrb[0].mxu1  ;;  %v519_v0 = vpop.f32.mrb[1].mxu0 }
 0x133   : > { %v2224_v2 = vadd.f32 %v606_v63, %v421_v55  ;;  %v2226_v3 = vadd.f32 %v519_v0, %v421_v55  ;;  %v608_v4 = vpop.f32.mrb[1].mxu1 }
 0x134   : > { %v2228_v5 = vadd.f32 %v608_v4, %v421_v55  ;;  %v653_v7 = vmul.f32 %v636_v56, %v2222_v62 }
 0x135   : > { %v655_v9 = vmul.f32 %v636_v56, %v2224_v2  ;;  %v523_v10 = vpop.f32.mrb[2].mxu0  ;;  %v654_v11 = vmul.f32 %v636_v56, %v2226_v3 }
 0x136   : > { %v2233_v12 = vadd.f32 %v523_v10, %v426_v57  ;;  %v612_v13 = vpop.f32.mrb[2].mxu1  ;;  %v525_v14 = vpop.f32.mrb[3].mxu0  ;;  %v656_v15 = vmul.f32 %v636_v56, %v2228_v5  ;;  %v693_v22 = vadd.f32 %v676_v1, %v653_v7 }
 0x137   : > { %v2236_v16 = vadd.f32 %v612_v13, %v426_v57  ;;  %v2238_v17 = vadd.f32 %v525_v14, %v426_v57  ;;  %v614_v18 = vpop.f32.mrb[3].mxu1  ;;  %v695_v23 = vadd.f32 %v676_v1, %v655_v9  ;;  %v694_v27 = vadd.f32 %v676_v1, %v654_v11  ;;  %v691_v7 = vpop.permute.xlu1 %690 }
 0x138   : > { %v657_v19 = vmul.f32 %v641_v58, %v2233_v12  ;;  %v2241_v20 = vadd.f32 %v614_v18, %v426_v57  ;;  %v696_v33 = vadd.f32 %v676_v1, %v656_v15  ;;  %v709_v42 = vmax.f32 %v693_v22, 0.0  ;;  %v686_v57 = vpop.permute.xlu0 %685 }
 0x139   : > { %v659_v24 = vmul.f32 %v641_v58, %v2236_v16  ;;  %v658_v25 = vmul.f32 %v641_v58, %v2238_v17  ;;  %v529_v26 = vpop.f32.mrb[4].mxu0  ;;  %v711_v46 = vmax.f32 %v695_v23, 0.0  ;;  %v710_v47 = vmax.f32 %v694_v27, 0.0 }
 0x13a   : > { %v697_v28 = vadd.f32 %v681_v6, %v657_v19  ;;  %v660_v29 = vmul.f32 %v641_v58, %v2241_v20  ;;  %v2246_v30 = vadd.f32 %v529_v26, %v431_v59  ;;  %v618_v31 = vpop.f32.mrb[4].mxu1  ;;  %v531_v32 = vpop.f32.mrb[5].mxu0  ;;  %v712_v52 = vmax.f32 %v696_v33, 0.0 }
 0x13b   : > { %v698_v34 = vadd.f32 %v681_v6, %v658_v25  ;;  %v2248_v35 = vadd.f32 %v531_v32, %v431_v59  ;;  %v620_v36 = vpop.f32.mrb[5].mxu1  ;;  %v699_v38 = vadd.f32 %v681_v6, %v659_v24  ;;  %v2250_v40 = vadd.f32 %v618_v31, %v431_v59 }
 0x13c   : > { %v700_v39 = vadd.f32 %v681_v6, %v660_v29  ;;  %v2252_v41 = vadd.f32 %v620_v36, %v431_v59  ;;  %v713_v43 = vmax.f32 %v697_v28, 0.0  ;;  %v661_v44 = vmul.f32 %v646_v21, %v2246_v30 }
 0x13d   : > { %v535_v45 = vpop.f32.mrb[6].mxu0  ;;  %v714_v48 = vmax.f32 %v698_v34, 0.0  ;;  %v662_v49 = vmul.f32 %v646_v21, %v2248_v35  ;;  %v715_v58 = vmax.f32 %v699_v38, 0.0  ;;  %v663_v59 = vmul.f32 %v646_v21, %v2250_v40 }
 0x13e   : > { %v624_v50 = vpop.f32.mrb[6].mxu1  ;;  %v537_v51 = vpop.f32.mrb[7].mxu0  ;;  %v716_v53 = vmax.f32 %v700_v39, 0.0  ;;  %v664_v54 = vmul.f32 %v646_v21, %v2252_v41  ;;  %v2258_v55 = vadd.f32 %v535_v45, %v2220_v60  ;;  %v1658_v0 = vpack.c.bf16 %v713_v43, %v709_v42  ;;  %v725_v39 = vld [vmem:[#allocation3] sm:$0xff]  ;;  %v726_v42 = vld [vmem:[#allocation3 + $0x8] sm:$0xff]  ;;  %v727_v43 = vld [vmem:[#allocation3 + $0x10] sm:$0xff] }
 0x13f   : > { %v626_v56 = vpop.f32.mrb[7].mxu1  ;;  %v2262_v61 = vadd.f32 %v624_v50, %v2220_v60  ;;  %v2265_v63 = vadd.f32 %v537_v51, %v2220_v60  ;;  %v701_v1 = vadd.f32 %v686_v57, %v661_v44  ;;  %v702_v9 = vadd.f32 %v686_v57, %v662_v49  ;;  %v728_v44 = vld [vmem:[#allocation3 + $0x18] sm:$0xff]  ;;  %v948_v45 = vpop.permute.xlu1 %947 }
 0x140   : > { %v665_v4 = vmul.f32 %v651_v37, %v2258_v55  ;;  %v2269_v6 = vadd.f32 %v626_v56, %v2220_v60  ;;  %v1656_v13 = vpack.c.bf16 %v714_v48, %v710_v47  ;;  %v704_v14 = vadd.f32 %v686_v57, %v664_v54 }
 0x141   : > { %v667_v10 = vmul.f32 %v651_v37, %v2262_v61  ;;  %v666_v11 = vmul.f32 %v651_v37, %v2265_v63  ;;  %v1664_v19 = vpack.c.bf16 %v716_v53, %v712_v52  ;;  %v1666_v21 = vpack.c.bf16 %v715_v58, %v711_v46  ;;  %v943_v46 = vpop.permute.xlu0 %942 }
 0x142   : > { %v705_v15 = vadd.f32 %v691_v7, %v665_v4  ;;  %v668_v18 = vmul.f32 %v651_v37, %v2269_v6  ;;  %v703_v22 = vadd.f32 %v686_v57, %v663_v59  ;;  %1657 = vmatprep.subr.bf16.mxu0 %v1656_v13  ;;  %v718_v26 = vmax.f32 %v702_v9, 0.0 }
 0x143   : > { %v707_v23 = vadd.f32 %v691_v7, %v667_v10  ;;  %v706_v24 = vadd.f32 %v691_v7, %v666_v11  ;;  %1665 = vmatprep.subr.bf16.mxu1 %v1664_v19  ;;  %1659 = vmatpush1.bf16.msra.mxu0 %v1658_v0  ;;  %v717_v29 = vmax.f32 %v701_v1, 0.0  ;;  %v720_v31 = vmax.f32 %v704_v14, 0.0  ;;  %v989_v47 = vpop.permute.xlu1 %988 }
 0x144   : > { %v721_v25 = vmax.f32 %v705_v15, 0.0  ;;  %v708_v60 = vadd.f32 %v691_v7, %v668_v18  ;;  %1667 = vmatpush1.bf16.msra.mxu1 %v1666_v21  ;;  %v719_v33 = vmax.f32 %v703_v22, 0.0 }
 0x145   : > { %v723_v27 = vmax.f32 %v707_v23, 0.0  ;;  %v722_v28 = vmax.f32 %v706_v24, 0.0  ;;  %v984_v48 = vpop.permute.xlu0 %983 }
 0x146   : > { %v724_v32 = vmax.f32 %v708_v60, 0.0  ;;  %v1662_v36 = vpack.c.bf16 %v721_v25, %v717_v29 }
 0x147   : > { %v1660_v34 = vpack.c.bf16 %v722_v28, %v718_v26  ;;  %v1670_v38 = vpack.c.bf16 %v723_v27, %v719_v33  ;;  %v2290_v49 = vpop.permute.xlu1 %957 }
 0x148   : > { %v1668_v37 = vpack.c.bf16 %v724_v32, %v720_v31 }
 0x149   : > { %1661 = vmatprep.subr.bf16.mxu0 %v1660_v34  ;;  %v953_v54 = vpop.permute.xlu0 %952 }
 0x14a   : > { %1669 = vmatprep.subr.bf16.mxu1 %v1668_v37  ;;  %1663 = vmatpush1.bf16.msra.mxu0 %v1662_v36 }
 0x14b   : > { %1671 = vmatpush1.bf16.msra.mxu1 %v1670_v38  ;;  %v2304_v13 = vpop.permute.xlu1 %1029 }
 0x14d   : > { %1612 = vmatmul.mubr.msk.f32.vlgmr.msra.gmra.mrb[8].mxu0 %vm729_vm1, %v725_v39  ;;  %v1025_v21 = vpop.permute.xlu0 %1024 }
 0x14e   : > { %1616 = vmatmul.mubr.msk.f32.vlgmr.msra.gmra.mrb[8].mxu1 %vm729_vm1, %v725_v39  ;;  %812 = vmatprep.mubr.f32.mxu0 %v1923_v8 }
 0x14f   : > { %901 = vmatprep.mubr.f32.mxu1 %v1923_v8  ;;  %v999_v37 = vpop.permute.xlu1 %998 }
 0x151   : > { %1613 = vmatmul.mubr.msk.f32.gmra.mrb[10].mxu0 %vm729_vm1, %v726_v42 }
 0x152   : > { %1617 = vmatmul.mubr.msk.f32.gmra.mrb[10].mxu1 %vm729_vm1, %v726_v42  ;;  %818 = vmatprep.mubr.f32.mxu0 %v1923_v8 }
 0x153   : > { %907 = vmatprep.mubr.f32.mxu1 %v1923_v8 }
 0x155   : > { %1614 = vmatmul.mubr.msk.f32.gmra.mrb[12].mxu0 %vm729_vm1, %v727_v43 }
 0x156   : > { %1618 = vmatmul.mubr.msk.f32.gmra.mrb[12].mxu1 %vm729_vm1, %v727_v43  ;;  %824 = vmatprep.mubr.f32.mxu0 %v1923_v8 }
 0x157   : > { %913 = vmatprep.mubr.f32.mxu1 %v1923_v8 }
 0x159   : > { %1615 = vmatmul.mubr.msk.f32.gmra.mrb[14].mxu0 %vm729_vm1, %v728_v44 }
 0x15a   : > { %1619 = vmatmul.mubr.msk.f32.gmra.mrb[14].mxu1 %vm729_vm1, %v728_v44  ;;  %1155 = vmatprep.mubr.f32.mxu0 %v1923_v8 }
 0x15b   : > { %1244 = vmatprep.mubr.f32.mxu1 %v1923_v8 }
 0x220   : > { %v808_v50 = vpop.f32.mrb[8].mxu0 }
 0x221   : > { %v920_v51 = vadd.f32 %v808_v50, %v2222_v62  ;;  %v897_v52 = vpop.f32.mrb[8].mxu1  ;;  %v810_v53 = vpop.f32.mrb[9].mxu0 }
 0x222   : > { %v922_v56 = vadd.f32 %v897_v52, %v2224_v2  ;;  %v921_v57 = vadd.f32 %v810_v53, %v2226_v3  ;;  %v899_v58 = vpop.f32.mrb[9].mxu1 }
 0x223   : > { %v2295_v59 = vadd.f32 %v943_v46, %v920_v51  ;;  %v923_v0 = vadd.f32 %v899_v58, %v2228_v5  ;;  %v994_v51 = vpop.permute.xlu0 %993 }
 0x224   : > { %v2298_v1 = vadd.f32 %v943_v46, %v922_v56  ;;  %v2300_v4 = vadd.f32 %v943_v46, %v921_v57  ;;  %v814_v7 = vpop.f32.mrb[10].mxu0 }
 0x225   : > { %v1001_v9 = vmul.f32 %v984_v48, %v2295_v59  ;;  %v924_v62 = vadd.f32 %v814_v7, %v2233_v12  ;;  %v903_v10 = vpop.f32.mrb[10].mxu1  ;;  %v816_v11 = vpop.f32.mrb[11].mxu0  ;;  %v2309_v15 = vadd.f32 %v943_v46, %v923_v0 }
 0x226   : > { %v1003_v2 = vmul.f32 %v984_v48, %v2298_v1  ;;  %v926_v3 = vadd.f32 %v903_v10, %v2236_v16  ;;  %v925_v14 = vadd.f32 %v816_v11, %v2238_v17  ;;  %v905_v5 = vpop.f32.mrb[11].mxu1  ;;  %v1002_v12 = vmul.f32 %v984_v48, %v2300_v4 }
 0x227   : > { %v2311_v18 = vadd.f32 %v948_v45, %v924_v62  ;;  %v927_v19 = vadd.f32 %v905_v5, %v2241_v20  ;;  %v1042_v25 = vadd.f32 %v1025_v21, %v1001_v9  ;;  %v1004_v32 = vmul.f32 %v984_v48, %v2309_v15 }
 0x228   : > { %v2315_v22 = vadd.f32 %v948_v45, %v926_v3  ;;  %v2317_v23 = vadd.f32 %v948_v45, %v925_v14  ;;  %v820_v24 = vpop.f32.mrb[12].mxu0  ;;  %v2319_v60 = vadd.f32 %v1025_v21, %v1003_v2  ;;  %v1043_v43 = vadd.f32 %v1025_v21, %v1002_v12  ;;  %v1040_v2 = vpop.permute.xlu1 %1039 }
 0x229   : > { %v1005_v16 = vmul.f32 %v989_v47, %v2311_v18  ;;  %v928_v17 = vadd.f32 %v820_v24, %v2246_v30  ;;  %v909_v26 = vpop.f32.mrb[12].mxu1  ;;  %v822_v27 = vpop.f32.mrb[13].mxu0  ;;  %v2324_v20 = vadd.f32 %v948_v45, %v927_v19  ;;  %v1058_v44 = vmax.f32 %v1042_v25, 0.0 }
 0x22a   : > { %v1006_v28 = vmul.f32 %v989_v47, %v2317_v23  ;;  %v930_v29 = vadd.f32 %v909_v26, %v2250_v40  ;;  %v911_v31 = vpop.f32.mrb[13].mxu1  ;;  %v1007_v34 = vmul.f32 %v989_v47, %v2315_v22  ;;  %v929_v36 = vadd.f32 %v822_v27, %v2248_v35  ;;  %v1035_v25 = vpop.permute.xlu0 %1034 }
 0x22b   : > { %v1046_v33 = vadd.f32 %v2304_v13, %v1005_v16  ;;  %v2331_v38 = vadd.f32 %v953_v54, %v928_v17  ;;  %v931_v39 = vadd.f32 %v911_v31, %v2252_v41  ;;  %v1060_v40 = vmax.f32 %v2319_v60, 0.0 }
 0x22c   : > { %v2333_v30 = vadd.f32 %v953_v54, %v930_v29  ;;  %v826_v42 = vpop.f32.mrb[14].mxu0  ;;  %v2337_v45 = vadd.f32 %v953_v54, %v929_v36  ;;  %v1008_v35 = vmul.f32 %v989_v47, %v2324_v20  ;;  %v1047_v41 = vadd.f32 %v2304_v13, %v1006_v28 }
 0x22d   : > { %v932_v46 = vadd.f32 %v826_v42, %v2258_v55  ;;  %v915_v48 = vpop.f32.mrb[14].mxu1  ;;  %v828_v50 = vpop.f32.mrb[15].mxu0  ;;  %v2341_v52 = vadd.f32 %v953_v54, %v931_v39  ;;  %v1062_v57 = vmax.f32 %v1046_v33, 0.0  ;;  %v1048_v58 = vadd.f32 %v2304_v13, %v1007_v34 }
 0x22e   : > { %v934_v53 = vadd.f32 %v915_v48, %v2262_v61  ;;  %v917_v56 = vpop.f32.mrb[15].mxu1  ;;  %v933_v55 = vadd.f32 %v828_v50, %v2265_v63  ;;  %v1009_v7 = vmul.f32 %v994_v51, %v2331_v38  ;;  %v1011_v9 = vmul.f32 %v994_v51, %v2333_v30 }
 0x22f   : > { %v2347_v0 = vadd.f32 %v2290_v49, %v932_v46  ;;  %v935_v61 = vadd.f32 %v917_v56, %v2269_v6  ;;  %v1010_v54 = vmul.f32 %v994_v51, %v2337_v45  ;;  %v1012_v62 = vmul.f32 %v994_v51, %v2341_v52 }
 0x230   : > { %v2353_v47 = vadd.f32 %v2290_v49, %v934_v53  ;;  %v2360_v11 = vadd.f32 %v2290_v49, %v933_v55  ;;  %v1059_v14 = vmax.f32 %v1043_v43, 0.0  ;;  %v1063_v5 = vmax.f32 %v1047_v41, 0.0  ;;  %v1075_v41 = vld [vmem:[#allocation3 + $0x20] sm:$0xff] }
 0x231   : > { %v1013_v10 = vmul.f32 %v999_v37, %v2347_v0  ;;  %v2364_v3 = vadd.f32 %v2290_v49, %v935_v61  ;;  %v1045_v12 = vadd.f32 %v1025_v21, %v1004_v32  ;;  %v1049_v24 = vadd.f32 %v2304_v13, %v1008_v35 }
 0x232   : > { %v1015_v63 = vmul.f32 %v999_v37, %v2353_v47  ;;  %v1014_v6 = vmul.f32 %v999_v37, %v2360_v11  ;;  %v1064_v60 = vmax.f32 %v1048_v58, 0.0  ;;  %v1672_v26 = vpack.c.bf16 %v1063_v5, %v1059_v14  ;;  %v1078_v58 = vld [vmem:[#allocation3 + $0x38] sm:$0xff] }
 0x233   : > { %v1054_v19 = vadd.f32 %v1040_v2, %v1013_v10  ;;  %v1016_v17 = vmul.f32 %v999_v37, %v2364_v3  ;;  %v1050_v27 = vadd.f32 %v1035_v25, %v1009_v7  ;;  %v1061_v28 = vmax.f32 %v1045_v12, 0.0  ;;  %v1298_v12 = vpop.permute.xlu1 %1297 }
 0x234   : > { %v1056_v16 = vadd.f32 %v1040_v2, %v1015_v63  ;;  %v1065_v29 = vmax.f32 %v1049_v24, 0.0  ;;  %v1674_v31 = vpack.c.bf16 %v1062_v57, %v1058_v44  ;;  %v1052_v49 = vadd.f32 %v1035_v25, %v1011_v9  ;;  %1673 = vmatprep.subr.bf16.mxu0 %v1672_v26  ;;  %v1077_v57 = vld [vmem:[#allocation3 + $0x30] sm:$0xff] }
 0x235   : > { %v1051_v33 = vadd.f32 %v1035_v25, %v1010_v54  ;;  %v1055_v34 = vadd.f32 %v1040_v2, %v1014_v6  ;;  %v1053_v36 = vadd.f32 %v1035_v25, %v1012_v62  ;;  %v1070_v39 = vmax.f32 %v1054_v19, 0.0  ;;  %v1293_v62 = vpop.permute.xlu0 %1292 }
 0x236   : > { %v1680_v42 = vpack.c.bf16 %v1065_v29, %v1061_v28  ;;  %1675 = vmatpush1.bf16.msra.mxu0 %v1674_v31  ;;  %v1057_v21 = vadd.f32 %v1040_v2, %v1016_v17  ;;  %v1072_v13 = vmax.f32 %v1056_v16, 0.0  ;;  %v1682_v32 = vpack.c.bf16 %v1064_v60, %v1060_v40  ;;  %v1076_v40 = vld [vmem:[#allocation3 + $0x28] sm:$0xff] }
 0x237   : > { %v1067_v43 = vmax.f32 %v1051_v33, 0.0  ;;  %v1071_v46 = vmax.f32 %v1055_v34, 0.0  ;;  %v1066_v48 = vmax.f32 %v1050_v27, 0.0  ;;  %v1069_v37 = vmax.f32 %v1053_v36, 0.0 }
 0x238   : > { %1681 = vmatprep.subr.bf16.mxu1 %v1680_v42  ;;  %v1073_v50 = vmax.f32 %v1057_v21, 0.0  ;;  %v1068_v51 = vmax.f32 %v1052_v49, 0.0 }
 0x239   : > { %1683 = vmatpush1.bf16.msra.mxu1 %v1682_v32  ;;  %v1676_v44 = vpack.c.bf16 %v1071_v46, %v1067_v43  ;;  %v1678_v53 = vpack.c.bf16 %v1070_v39, %v1066_v48  ;;  %v1303_v36 = vpop.permute.xlu0 %1302  ;;  %v1308_v46 = vpop.permute.xlu1 %1307 }
 0x23a   : > { %v1684_v35 = vpack.c.bf16 %v1073_v50, %v1069_v37  ;;  %v1686_v56 = vpack.c.bf16 %v1072_v13, %v1068_v51 }
 0x23b   : > { %1677 = vmatprep.subr.bf16.mxu0 %v1676_v44 }
 0x23c   : > { %1685 = vmatprep.subr.bf16.mxu1 %v1684_v35  ;;  %1679 = vmatpush1.bf16.msra.mxu0 %v1678_v53 }
 0x23d   : > { %1687 = vmatpush1.bf16.msra.mxu1 %v1686_v56 }
 0x23f   : > { %1628 = vmatmul.mubr.msk.f32.vlgmr.msra.gmra.mrb[16].mxu0 %vm729_vm1, %v1075_v41 }
 0x240   : > { %1632 = vmatmul.mubr.msk.f32.vlgmr.msra.gmra.mrb[16].mxu1 %vm729_vm1, %v1075_v41  ;;  %1161 = vmatprep.mubr.f32.mxu0 %v1923_v8 }
 0x241   : > { %1250 = vmatprep.mubr.f32.mxu1 %v1923_v8 }
 0x243   : > { %1629 = vmatmul.mubr.msk.f32.gmra.mrb[18].mxu0 %vm729_vm1, %v1076_v40 }
 0x244   : > { %1633 = vmatmul.mubr.msk.f32.gmra.mrb[18].mxu1 %vm729_vm1, %v1076_v40  ;;  %1167 = vmatprep.mubr.f32.mxu0 %v1923_v8 }
 0x245   : > { %1256 = vmatprep.mubr.f32.mxu1 %v1923_v8 }
 0x247   : > { %1630 = vmatmul.mubr.msk.f32.gmra.mrb[20].mxu0 %vm729_vm1, %v1077_v57 }
 0x248   : > { %1634 = vmatmul.mubr.msk.f32.gmra.mrb[20].mxu1 %vm729_vm1, %v1077_v57  ;;  %1173 = vmatprep.mubr.f32.mxu0 %v1923_v8 }
 0x249   : > { %1262 = vmatprep.mubr.f32.mxu1 %v1923_v8 }
 0x24b   : > { %1631 = vmatmul.mubr.msk.f32.gmra.mrb[22].mxu0 %vm729_vm1, %v1078_v58 }
 0x24c   : > { %1635 = vmatmul.mubr.msk.f32.gmra.mrb[22].mxu1 %vm729_vm1, %v1078_v58  ;;  %1398 = vmatprep.mubr.f32.mxu0 %v1923_v8 }
 0x24d   : > { %1469 = vmatprep.mubr.f32.mxu1 %v1923_v8 }
 0x312   : > { %v1157_v55 = vpop.f32.mrb[16].mxu0 }
 0x313   : > { %v1246_v7 = vpop.f32.mrb[16].mxu1  ;;  %v1159_v9 = vpop.f32.mrb[17].mxu0  ;;  %v1269_v54 = vadd.f32 %v1157_v55, %v2295_v59 }
 0x314   : > { %v1248_v61 = vpop.f32.mrb[17].mxu1  ;;  %v1271_v10 = vadd.f32 %v1246_v7, %v2298_v1  ;;  %v1270_v2 = vadd.f32 %v1159_v9, %v2300_v4 }
 0x315   : > { %v1272_v14 = vadd.f32 %v1248_v61, %v2309_v15  ;;  %v1310_v60 = vadd.f32 %v1293_v62, %v1269_v54 }
 0x316   : > { %v1163_v63 = vpop.f32.mrb[18].mxu0  ;;  %v1312_v1 = vadd.f32 %v1293_v62, %v1271_v10  ;;  %v1311_v17 = vadd.f32 %v1293_v62, %v1270_v2 }
 0x317   : > { %v1273_v5 = vadd.f32 %v1163_v63, %v2311_v18  ;;  %v1252_v19 = vpop.f32.mrb[18].mxu1  ;;  %v1165_v6 = vpop.f32.mrb[19].mxu0  ;;  %v1313_v15 = vadd.f32 %v1293_v62, %v1272_v14 }
 0x318   : > { %v1275_v8 = vadd.f32 %v1252_v19, %v2315_v22  ;;  %v1274_v24 = vadd.f32 %v1165_v6, %v2317_v23  ;;  %v1254_v25 = vpop.f32.mrb[19].mxu1 }
 0x319   : > { %v1314_v59 = vadd.f32 %v1298_v12, %v1273_v5  ;;  %v1276_v16 = vadd.f32 %v1254_v25, %v2324_v20 }
 0x31a   : > { %v1316_v4 = vadd.f32 %v1298_v12, %v1275_v8  ;;  %v1315_v26 = vadd.f32 %v1298_v12, %v1274_v24  ;;  %v1169_v27 = vpop.f32.mrb[20].mxu0 }
 0x31b   : > { %v1690_v28 = vpack.c.bf16 %v1314_v59, %v1310_v60  ;;  %v1317_v18 = vadd.f32 %v1298_v12, %v1276_v16  ;;  %v1258_v29 = vpop.f32.mrb[20].mxu1  ;;  %v1171_v31 = vpop.f32.mrb[21].mxu0  ;;  %v1277_v23 = vadd.f32 %v1169_v27, %v2331_v38 }
 0x31c   : > { %v1698_v49 = vpack.c.bf16 %v1316_v4, %v1312_v1  ;;  %v1260_v33 = vpop.f32.mrb[21].mxu1  ;;  %v1688_v22 = vpack.c.bf16 %v1315_v26, %v1311_v17  ;;  %v1279_v39 = vadd.f32 %v1258_v29, %v2333_v30  ;;  %v1278_v20 = vadd.f32 %v1171_v31, %v2337_v45 }
 0x31d   : > { %v1696_v34 = vpack.c.bf16 %v1317_v18, %v1313_v15  ;;  %v1280_v21 = vadd.f32 %v1260_v33, %v2341_v52  ;;  %v1318_v30 = vadd.f32 %v1303_v36, %v1277_v23 }
 0x31e   : > { %v1175_v42 = vpop.f32.mrb[22].mxu0  ;;  %1689 = vmatprep.subr.bf16.mxu0 %v1688_v22  ;;  %v1320_v51 = vadd.f32 %v1303_v36, %v1279_v39  ;;  %v1319_v44 = vadd.f32 %v1303_v36, %v1278_v20 }
 0x31f   : > { %v1281_v13 = vadd.f32 %v1175_v42, %v2347_v0  ;;  %v1264_v32 = vpop.f32.mrb[22].mxu1  ;;  %1697 = vmatprep.subr.bf16.mxu1 %v1696_v34  ;;  %v1177_v43 = vpop.f32.mrb[23].mxu0  ;;  %1691 = vmatpush1.bf16.msra.mxu0 %v1690_v28  ;;  %v1321_v35 = vadd.f32 %v1303_v36, %v1280_v21 }
 0x320   : > { %v1283_v48 = vadd.f32 %v1264_v32, %v2353_v47  ;;  %v1282_v38 = vadd.f32 %v1177_v43, %v2360_v11  ;;  %v1266_v37 = vpop.f32.mrb[23].mxu1  ;;  %1699 = vmatpush1.bf16.msra.mxu1 %v1698_v49  ;;  %v408_v11 = vld [vmem:[%s2504_s19] sm:$0xff]  ;;  %s1824_s19 = sshll.u32 %s1925_s17, 4  ;;  %s1825_s19 = int_to_ptr.vmem [resolvable:$false] %s1824_s19 }
 0x321   : > { %v1322_v50 = vadd.f32 %v1308_v46, %v1281_v13  ;;  %v1284_v45 = vadd.f32 %v1266_v37, %v2364_v3  ;;  %v1329_v3 = vpop.permute.xlu0 %1328  ;;  %s1826_s21 = scalar_lea.vmem %s1825_s19, 1024  ;;  %p1827_p5 = scmp.lt.s32.totalorder %s2414_s24, %s1825_s19 }
 0x322   : > { %v1324_v52 = vadd.f32 %v1308_v46, %v1283_v48  ;;  %v1323_v0 = vadd.f32 %v1308_v46, %v1282_v38  ;;  %p1828_p7 = scmp.lt.s32.totalorder %s1826_s21, %s1820_s18 }
 0x323   : > { %v1694_v53 = vpack.c.bf16 %v1322_v50, %v1318_v30  ;;  %v1325_v56 = vadd.f32 %v1308_v46, %v1284_v45 }
 0x324   : > { %v1702_v41 = vpack.c.bf16 %v1324_v52, %v1320_v51  ;;  %v1692_v47 = vpack.c.bf16 %v1323_v0, %v1319_v44  ;;  %p1829_p10 = por %p1828_p7, %p1827_p5 }
 0x325   : > { %v1700_v40 = vpack.c.bf16 %v1325_v56, %v1321_v35 }
 0x326   : > { %1693 = vmatprep.subr.bf16.mxu0 %v1692_v47  ;;  %p1830_p11 = pnand %p1829_p10, %p1823_p2 }
 0x327   : > { %1701 = vmatprep.subr.bf16.mxu1 %v1700_v40  ;;  %1695 = vmatpush1.bf16.msra.mxu0 %v1694_v53 }
 0x328   : > { %1703 = vmatpush1.bf16.msra.mxu1 %v1702_v41 }
 0x32a   : > { %1640 = vmatmul.mubr.msk.f32.vlgmr.msra.gmra.mrb[24].mxu0 %vm729_vm1, %v408_v11 }
 0x32b   : > { %1641 = vmatmul.mubr.msk.f32.vlgmr.msra.gmra.mrb[24].mxu1 %vm729_vm1, %v408_v11 }
 0x3fd   : > { %v1400_v57 = vpop.f32.mrb[24].mxu0 }
 0x3fe   : > { %v1401_v58 = vadd.f32 %v1400_v57, %v1329_v3  ;;  %v1471_v55 = vpop.f32.mrb[24].mxu1  ;;  %v1402_v7 = vpop.f32.mrb[25].mxu0 }
 0x3ff   : > { %v1472_v9 = vadd.f32 %v1471_v55, %v1329_v3  ;;  %v1403_v61 = vadd.f32 %v1402_v7, %v1329_v3  ;;  %v1473_v54 = vpop.f32.mrb[25].mxu1 }
 0x400   : > { %1476 = vst [vmem:[%s397_s23] sm:$0xff] %v1401_v58  ;;  %v1474_v62 = vadd.f32 %v1473_v54, %v1329_v3 }
 0x401   : > { %1478 = vst [vmem:[%s397_s23 + $0x10] sm:$0xff] %v1472_v9  ;;  %1477 = vst [vmem:[%s397_s23 + $0x8] sm:$0xff] %v1403_v61 }
 0x402   : > { %1479 = vst [vmem:[%s397_s23 + $0x18] sm:$0xff] %v1474_v62 }
 0x403   : > { %1833 = shalt.err (!%p1830_p11)
}
 0x404   : > { %s1834_s7 = scalar_lea.hbm %s2412_s13, 512  ;;  %s1838_s20 = scalar_lea.hbm %s2507_s25, 2048 }
 0x405   : > { %p1835_p12 = scmp.ne.s32.totalorder %s2412_s13, %s1834_s7  ;;  %p1839_p6 = scmp.lt.u32.totalorder %s2412_s13, %s2507_s25 }
 0x406   : > { %p1840_p3 = scmp.lt.u32.totalorder %s1838_s20, %s1834_s7  ;;  %p1842_p9 = scmp.lt.u32.totalorder %s1834_s7, %s2412_s13 }
 0x407   : > { %p1836_p1 = pnand %p1835_p12, %p2508_p13 }
 0x408   : > { %p1841_p8 = por %p1840_p3, %p1839_p6 }
 0x409   : > { %p1837_p4 = pneg %p1836_p1 }
 0x40a   : > { %p1843_p0 = por %p1842_p9, %p1841_p8 }
 0x40c   : > { %p1844_p2 = pnand %p1843_p0, %p1837_p4 }
 0x40e   : > { %1847 = shalt.err (!%p1844_p2)
}
 0x40f   : > { %1708 = dma.vmem_to_hbm [thread:$0]  (%p2508_p13), %s2414_s24, 512, %s2412_s13, %s1481_s27  }
 0x410 PF: > { %s2509_s29 = sld [smem:[#allocation9_spill]]  ;;  %s2510_s30 = sld [smem:[#allocation13_spill]] }
 0x411   : > { %p1720_p5 = scmp.ge.s32.totalorder %s1918_s16, 2 }
 0x416   : > { %s1509_s12 = sand.u32 1, %s2509_s29   ;;  %p2511_p7 = scmp.ne.s32.totalorder %s2510_s30, 0 }
 0x417   : > { %s1510_s18 = scalar_lea.sflag [#allocation5], %s1509_s12 }
 0x418   : > { %p1715_p10 = pnand %p1720_p5, %p2511_p7 }
 0x41a   : > { %1885 = dma.done.wait (!%p1715_p10), %s1510_s18, 512  }
 0x41b   : > { %1887 = vsyncadd (!%p1715_p10), %s1510_s18, 4294966784  ;;  %s23_s16 = sadd.s32 1, %s1918_s16   ;;  %s2512_s28 = sld [smem:[#allocation14_spill]] }
 0x41c   : > { %p20_p11 = scmp.ge.s32.totalorder %s23_s16, 6   ;;  %s2513_s24 = sld [smem:[#allocation10_spill]] }
 0x41d   : > { %s2514_s27 = sld [smem:[#allocation11_spill]]  ;;  %s2515_s30 = smov %s1894_s10 }
 0x41e   : > { %s2516_s10 = smov %s1898_s11  ;;  %s2518_s12 = smov %s1910_s14 }
 0x41f   : > { %s2519_s13 = smov %s1914_s15  ;;  %22 = sbr.rel (!%p20_p11) target bundleno = 9 (0x9), region = 128 }
 0x421   : > { %s2517_s11 = smov %s2512_s28 }
 0x422   : > { %s2520_s14 = smov %s2513_s24 }
 0x423   : > { %s2521_s15 = smov %s2514_s27 }
 0x426   :  { %1515 = vsyncpa [#allocation4], 1 }
 0x427   :  { %1517 = vsyncpa [#allocation4 + $0x1], 1 }
 0x428   :  { %1518 = vsyncpa [#allocation5], 1 }
 0x429   :  { %1520 = vsyncpa [#allocation5 + $0x1], 1 }

</bundles_post_ra>
